<compile_context>
chip_gen: v6e
topology: v6e:2x2x1
jax: 0.10.0
libtpu: 0.0.40
codegen_flags: <defaults>
</compile_context>

<pallas_src>
import jax
import jax.numpy as jnp
import numpy as np
from jax.experimental import pallas as pl
from jax.experimental.pallas import tpu as pltpu


# -----------------------------------------------------------------------------
# Pallas kernel: one grid step = one (batch b, chunk of tb time slices).
# All sigma-dependent scalars were folded into w_ref / bias_ref in the wrapper.
# -----------------------------------------------------------------------------
def _denoiser_kernel(x_ref, w_ref, bias_ref, o_ref):
    # x_ref:    (1, tb*2C, HWp)    latent slab (time*channels sublanes, spatial lanes)
    # w_ref:    (1, tb*C, tb*2C)   block-diagonal folded weight (per batch element)
    # bias_ref: (1, tb*C, 1)       folded bias column (f32, broadcast over lanes)
    # o_ref:    (1, tb*C, HWp)     denoised output slab (x.dtype)
    y = jnp.dot(w_ref[0], x_ref[0], preferred_element_type=jnp.float32)
    o_ref[0] = (y + bias_ref[0]).astype(o_ref.dtype)


# -----------------------------------------------------------------------------
# tb selection: largest tb dividing T such that
#   * input block (tb*2C, HWp) stays under the byte target,
#   * tb*2C <= max_k  (keeps the block-diagonal weight KiB-scale, MXU K small),
#   * tb*C is sublane aligned (16 rows for 2-byte dtypes, 8 for f32).
# Fallback tb=T gives full-extent blocks, which are always layout-legal.
# -----------------------------------------------------------------------------
def _choose_tb(T, C, C2, HW, itemsize, target_bytes, max_k=512):
    bytes_per_slice = C2 * HW * itemsize
    cap = max(1, min(T, target_bytes // bytes_per_slice, max_k // C2))
    sub_align = 8 * max(1, 4 // itemsize)          # 8 (f32) / 16 (bf16, f16)
    for align in (sub_align, 8):
        for tb in range(int(cap), 0, -1):
            if T % tb == 0 and (tb * C) % align == 0:
                return tb
    return T


# -----------------------------------------------------------------------------
# Wrapper: VScaling + scalar folding + block sizing + pallas_call plumbing.
# -----------------------------------------------------------------------------
def denoiser_forward(x, sigma, w_net, b_net, emb_net,
                     block_bytes_target=6 * 1024 * 1024):
    """x: [B, T, 2C, H, W] (bf16 or f32), sigma: [B] -> [B, T, C, H, W] x.dtype."""
    B, T, C2, H, W = x.shape
    C = C2 // 2
    HW = H * W
    f32 = jnp.float32
    itemsize = int(np.dtype(x.dtype).itemsize)
    sigma = sigma.astype(f32)

    # --- VScaling (sgm.modules.diffusionmodules.denoiser_scaling.VScaling) ---
    c_skip = 1.0 / (sigma * sigma + 1.0)                 # (B,)
    c_out = -sigma / jnp.sqrt(sigma * sigma + 1.0)       # (B,)
    c_in = 1.0 / jnp.sqrt(sigma * sigma + 1.0)           # (B,)
    c_noise = sigma                                      # possibly_quantize_c_noise = id
    # TODO(synk): self.weighting(sigma) (Denoiser.w) is never used in forward(); omitted.

    # --- fold every sigma scalar into a per-batch effective weight / bias ----
    #   out = c_out*(W @ x_scaled + b + c_noise*emb) + c_skip * x_scaled[:C]
    #       = W_eff @ x_raw + bias_eff        (x_scaled = [c_in*x_top ; x_bot])
    eye = jnp.eye(C, dtype=f32)
    w_top = ((c_out * c_in)[:, None, None] * w_net[None, :, :C]
             + (c_skip * c_in)[:, None, None] * eye[None])            # (B, C, C)
    w_bot = c_out[:, None, None] * w_net[None, :, C:]                 # (B, C, C)
    w_eff = jnp.concatenate([w_top, w_bot], axis=2)                   # (B, C, 2C)
    bias_eff = c_out[:, None] * (b_net[None, :]
                                 + c_noise[:, None] * emb_net[None, :])  # (B, C)

    # --- batch tb time slices per grid step; expand W_eff block-diagonally ---
    tb = _choose_tb(T, C, C2, HW, itemsize, block_bytes_target)
    w_bd = jnp.einsum("ij,boc->biojc", jnp.eye(tb, dtype=f32), w_eff)
    w_bd = w_bd.reshape(B, tb * C, tb * C2).astype(x.dtype)           # (B, tb*C, tb*2C)
    bias_bd = jnp.tile(bias_eff, (1, tb))[:, :, None]                 # (B, tb*C, 1) f32

    # --- sublane/lane-dense slabs; pad spatial to a lane (128) multiple ------
    HWp = -(-HW // 128) * 128
    x2d = x.reshape(B, T * C2, HW)
    if HWp != HW:
        x2d = jnp.pad(x2d, ((0, 0), (0, 0), (0, HWp - HW)))

    # --- explicit VMEM budget: double-buffered in/out, f32 acc, weights ------
    in_blk = tb * C2 * HWp * itemsize
    out_blk = tb * C * HWp * itemsize
    acc_blk = tb * C * HWp * 4
    w_blk = (tb * C) * (tb * C2) * itemsize
    bias_blk = max(8, tb * C) * 128 * 4
    footprint = 2 * (in_blk + out_blk + w_blk + bias_blk) + acc_blk
    vmem_limit = int(min(48 << 20, max(32 << 20, 2 * footprint)))

    cost = pl.CostEstimate(
        flops=2 * B * T * C * C2 * HW + 2 * B * T * C * HW,
        transcendentals=0,
        bytes_accessed=(x2d.size * itemsize
                        + B * T * C * HWp * itemsize
                        + B * (tb * C) * (tb * C2) * itemsize
                        + bias_bd.size * 4))

    out2d = pl.pallas_call(
        _denoiser_kernel,
        out_shape=jax.ShapeDtypeStruct((B, T * C, HWp), x.dtype),
        grid=(B, T // tb),
        in_specs=[
            pl.BlockSpec((1, tb * C2, HWp), lambda b, t: (b, t, 0)),      # x slab
            pl.BlockSpec((1, tb * C, tb * C2), lambda b, t: (b, 0, 0)),   # W_bd
            pl.BlockSpec((1, tb * C, 1), lambda b, t: (b, 0, 0)),         # bias
        ],
        out_specs=pl.BlockSpec((1, tb * C, HWp), lambda b, t: (b, t, 0)),
        compiler_params=pltpu.CompilerParams(
            dimension_semantics=("parallel", "parallel"),
            vmem_limit_bytes=vmem_limit),
        cost_estimate=cost,
    )(x2d, w_bd, bias_bd)

    if HWp != HW:
        out2d = out2d[..., :HW]
    return out2d.reshape(B, T, C, H, W)


# -----------------------------------------------------------------------------
# Pure-JAX reference (mirrors the PyTorch forward literally, in f32).
# -----------------------------------------------------------------------------
def denoiser_reference(x, sigma, w_net, b_net, emb_net):
    x = x.astype(jnp.float32)
    B, T, C2, H, W = x.shape
    C = C2 // 2
    s = sigma.astype(jnp.float32).reshape(B, 1, 1, 1, 1)   # append_dims(sigma, ndim)
    c_skip = 1.0 / (s * s + 1.0)
    c_out = -s / jnp.sqrt(s * s + 1.0)
    c_in = 1.0 / jnp.sqrt(s * s + 1.0)
    c_noise = sigma.astype(jnp.float32)                    # reshape(sigma_shape)

    x = x.at[:, :, :C].multiply(c_in)                      # in-place `input[:,:, :C] *= c_in`
    net = (jnp.einsum("oc,btchw->btohw", w_net, x,
                      precision=jax.lax.Precision.HIGHEST)
           + b_net.reshape(1, 1, C, 1, 1)
           + c_noise.reshape(B, 1, 1, 1, 1) * emb_net.reshape(1, 1, C, 1, 1))
    return net * c_out + x[:, :, :C] * c_skip


# -----------------------------------------------------------------------------
if __name__ == "__main__":
    B, T, C, H, W = 2, 8, 4, 16, 16          # latent has 2C = 8 channels
    key = jax.random.PRNGKey(0)
    k_x, k_s, k_w, k_b, k_e = jax.random.split(key, 5)

    # Latent arrives in bf16 (native CogVideoX inference dtype) -> bf16 kernel I/O.
    x = jax.random.normal(k_x, (B, T, 2 * C, H, W),
                          dtype=jnp.float32).astype(jnp.bfloat16)
    sigma = jax.random.uniform(k_s, (B,), dtype=jnp.float32, minval=0.1, maxval=2.0)

    # deterministic synthetic "network" parameters (stand-in for the DiT)
    w_net = 0.1 * jax.random.normal(k_w, (C, 2 * C), dtype=jnp.float32)
    b_net = 0.05 * jax.random.normal(k_b, (C,), dtype=jnp.float32)
    emb_net = 0.05 * jax.random.normal(k_e, (C,), dtype=jnp.float32)

    out = jax.jit(denoiser_forward)(x, sigma, w_net, b_net, emb_net)
    out = jax.block_until_ready(out)
    assert out.shape == (B, T, C, H, W) and out.dtype == x.dtype

    ref = denoiser_reference(x, sigma, w_net, b_net, emb_net)
    np.testing.assert_allclose(np.asarray(out, dtype=np.float32), np.asarray(ref),
                               rtol=2e-2, atol=2e-2)   # bf16 I/O tolerance

    print("KERNEL_OK")
</pallas_src>

<mosaic_0001>
module attributes {stable_mosaic.version = 11 : i64} {
  func.func @_denoiser_kernel(%arg0: i32, %arg1: i32, %arg2: memref<1x64x256xbf16, #tpu.memory_space<vmem>>, %arg3: memref<1x32x64xbf16, #tpu.memory_space<vmem>>, %arg4: memref<1x32x1xf32, #tpu.memory_space<vmem>>, %arg5: memref<1x32x256xbf16, #tpu.memory_space<vmem>>) attributes {dimension_semantics = [#tpu.dimension_semantics<parallel>, #tpu.dimension_semantics<parallel>], iteration_bounds = array<i64: 2, 1>, scalar_prefetch = 0 : i64, scratch_operands = 0 : i64, tpu.core_type = #tpu.core_type<tc>, window_params = [{transform_indices = @transform_0, window_bounds = array<i64: 1, 64, 256>}, {transform_indices = @transform_1, window_bounds = array<i64: 1, 32, 64>}, {transform_indices = @transform_2, window_bounds = array<i64: 1, 32, 1>}, {transform_indices = @transform_3, window_bounds = array<i64: 1, 32, 256>}]} {
    %c0 = arith.constant 0 : index
    %c0_0 = arith.constant 0 : index
    %c0_1 = arith.constant 0 : index
    %0 = vector.load %arg3[%c0, %c0_0, %c0_1] : memref<1x32x64xbf16, #tpu.memory_space<vmem>>, vector<1x32x64xbf16>
    %1 = vector.shape_cast %0 : vector<1x32x64xbf16> to vector<32x64xbf16>
    %c0_2 = arith.constant 0 : index
    %c0_3 = arith.constant 0 : index
    %c0_4 = arith.constant 0 : index
    %2 = vector.load %arg2[%c0_2, %c0_3, %c0_4] : memref<1x64x256xbf16, #tpu.memory_space<vmem>>, vector<1x64x256xbf16>
    %3 = vector.shape_cast %2 : vector<1x64x256xbf16> to vector<64x256xbf16>
    %cst = arith.constant dense<0.000000e+00> : vector<32x256xf32>
    %4 = tpu.matmul %1, %3, %cst {dimension_numbers = #tpu.dot_dimension_numbers<[1], [0], [0], [1], [0, 0, 1, 1], [], []>} : vector<32x64xbf16>, vector<64x256xbf16>, vector<32x256xf32> -> vector<32x256xf32>
    %c0_5 = arith.constant 0 : index
    %c0_6 = arith.constant 0 : index
    %c0_7 = arith.constant 0 : index
    %5 = vector.load %arg4[%c0_5, %c0_6, %c0_7] : memref<1x32x1xf32, #tpu.memory_space<vmem>>, vector<1x32x1xf32>
    %6 = vector.shape_cast %5 : vector<1x32x1xf32> to vector<32x1xf32>
    %7 = vector.broadcast %6 : vector<32x1xf32> to vector<32x256xf32>
    %8 = arith.addf %4, %7 : vector<32x256xf32>
    %9 = arith.truncf %8 : vector<32x256xf32> to vector<32x256xbf16>
    %c0_8 = arith.constant 0 : index
    %c0_9 = arith.constant 0 : index
    %c0_10 = arith.constant 0 : index
    %10 = vector.load %arg5[%c0_8, %c0_9, %c0_10] : memref<1x32x256xbf16, #tpu.memory_space<vmem>>, vector<1x32x256xbf16>
    %11 = vector.shape_cast %10 : vector<1x32x256xbf16> to vector<32x256xbf16>
    %12 = vector.shape_cast %9 : vector<32x256xbf16> to vector<1x32x256xbf16>
    tpu.vector_store %arg5[%c0_8, %c0_9, %c0_10], %12 {strides = array<i32>} : memref<1x32x256xbf16, #tpu.memory_space<vmem>>, vector<1x32x256xbf16>,
    return
  }
  func.func @transform_0(%arg0: i32, %arg1: i32) -> (i32, i32, i32) {
    %c0_i32 = arith.constant 0 : i32
    %c0_i32_0 = arith.constant 0 : i32
    return %arg0, %arg1, %c0_i32 : i32, i32, i32
  }
  func.func @transform_1(%arg0: i32, %arg1: i32) -> (i32, i32, i32) {
    %c0_i32 = arith.constant 0 : i32
    %c0_i32_0 = arith.constant 0 : i32
    %c0_i32_1 = arith.constant 0 : i32
    return %arg0, %c0_i32, %c0_i32_0 : i32, i32, i32
  }
  func.func @transform_2(%arg0: i32, %arg1: i32) -> (i32, i32, i32) {
    %c0_i32 = arith.constant 0 : i32
    %c0_i32_0 = arith.constant 0 : i32
    %c0_i32_1 = arith.constant 0 : i32
    return %arg0, %c0_i32, %c0_i32_0 : i32, i32, i32
  }
  func.func @transform_3(%arg0: i32, %arg1: i32) -> (i32, i32, i32) {
    %c0_i32 = arith.constant 0 : i32
    %c0_i32_0 = arith.constant 0 : i32
    return %arg0, %arg1, %c0_i32 : i32, i32, i32
  }
}

</mosaic_0001>

<bundles_post_ra>
// kernel: denoiser_forward.1
= control target key start
LH: loop header
LB: loop body
LE: loop exit
PB: predicated region body
PF: predicated region fallthrough
CT: control target
= control target key end

     0   :  { %s683_s12 = smov 0   ;;  %s685_s13 = smov 0   ;;  %s731_s0 = inlined_call_operand.vmem [shape: bf16[2,64,256], index: 0, kind: input, shape index: {}]   ;;  %s732_s1 = inlined_call_operand.vmem [shape: bf16[2,32,64], index: 1, kind: input, shape index: {}]   ;;  %s733_s2 = inlined_call_operand.vmem [shape: f32[2,32,1], index: 2, kind: input, shape index: {}]   ;;  %s734_s3 = inlined_call_operand.vmem [shape: bf16[2,32,256], index: 3, kind: output, shape index: {}]  }
   0x1   :  { %s687_s14 = smov 0  }
   0x2 LB: > { %s25_s15 = sadd.s32 1, %s656_s13  ;;  %p554_p0 = scmp.ge.s32.totalorder %s660_s14, 1  ;;  %s660_s14 = sphi %s687_s14, %s13_s14   ;;  %s656_s13 = sphi %s685_s13, %s736_s13   ;;  %s652_s12 = sphi %s683_s12, %s735_s12  }
   0x3   : > { %p27_p1 = scmp.ge.s32.totalorder %s25_s15, 2  ;;  %p179_p2 = scmp.lt.s32.totalorder %s660_s14, 3 }
   0x5   : > { %s738_s15 = smov (%p27_p1, %s25_s15), 0  ;;  %p180_p3 = pnand %p554_p0, %p179_p2 }
   0x6   : > { %p224_p4 = scmp.lt.s32.totalorder (!%p180_p3), %s652_s12, 1 }
   0x7   : > { %183 = sbr.rel (%p180_p3) target bundleno = 236 (0xec), region = 32 }
   0xc   : > { %v662_v0 = vmov 0   ;;  %s740_s12 = smov (!%p224_p4, %s652_s12), 1  ;;  %vm342_vm0 = vcmask 523264  }
   0xd   : > { %381 = vmatprep.mubr.bf16.mxu0 %v662_v0  ;;  %391 = vmatprep.mubr.bf16.mxu1 %v662_v0  ;;  %s581_s16 = sshll.u32 %s740_s12, 6  ;;  %s582_s20 = sshll.u32 %s740_s12, 4 }
   0xe   : > { %623 = vset.pattern.permute.xlu1 %v662_v0  ;;  %622 = vset.pattern.permute.xlu0 %v662_v0  ;;  %s232_s19 = scalar_lea.vmem %s731_s0, %s581_s16  ;;  %s583_s21 = sshll.u32 %s740_s12, 5 }
   0xf   : > { %v624_v1 = vld [vmem:[%s232_s19 + $0x34] ss:$8 sps:$4 sm:$0xff]   ;;  %v626_v2 = vld [vmem:[%s232_s19 + $0x30] ss:$8 sps:$4 sm:$0xff]   ;;  %v627_v3 = vld [vmem:[%s232_s19 + $0x24] ss:$8 sps:$4 sm:$0xff]   ;;  %s238_s24 = scalar_lea.vmem %s732_s1, %s582_s20  ;;  %s243_s27 = scalar_lea.vmem %s733_s2, %s583_s21 }
  0x10   : > { %357 = vmatprep.subr.bf16.mxu0 %v624_v1  ;;  %589 = vmatprep.subr.bf16.mxu1 %v624_v1  ;;  %v629_v4 = vld [vmem:[%s232_s19 + $0x20] ss:$8 sps:$4 sm:$0xff]   ;;  %v630_v5 = vld [vmem:[%s232_s19 + $0x14] ss:$8 sps:$4 sm:$0xff]   ;;  %v632_v6 = vld [vmem:[%s232_s19 + $0x10] ss:$8 sps:$4 sm:$0xff]   ;;  %s253_s30 = scalar_lea.vmem %s734_s3, %s583_s21 }
  0x11   : > { %358 = vmatpush1.bf16.msra.mxu0 %v626_v2  ;;  %593 = vmatpush1.bf16.msra.mxu1 %v626_v2  ;;  %v270_v7 = vld [vmem:[%s243_s27 + $0x10] sm:$0xff]  ;;  %v268_v8 = vld [vmem:[%s243_s27] sm:$0xff]  ;;  %v271_v10 = vld [vmem:[%s243_s27 + $0x18] sm:$0xff] }
  0x12   : > { %359 = vmatprep.subr.bf16.mxu0 %v627_v3  ;;  %590 = vmatprep.subr.bf16.mxu1 %v627_v3  ;;  %v633_v9 = vld [vmem:[%s232_s19 + $0x4] ss:$8 sps:$4 sm:$0xff]   ;;  %v635_v12 = vld [vmem:[%s232_s19] ss:$8 sps:$4 sm:$0xff]  }
  0x13   : > { %284 = vperm.xlu1 %623, %v270_v7   ;;  %274 = vperm.xlu0 %622, %v268_v8   ;;  %v269_v11 = vld [vmem:[%s243_s27 + $0x8] sm:$0xff]  ;;  %v636_v13 = vld [vmem:[%s238_s24] sm:$0xff]  }
  0x14   : > { %v637_v14 = vld [vmem:[%s238_s24 + $0x8] sm:$0xff]  }
  0x15   : > { %360 = vmatpush1.bf16.msra.mxu0 %v629_v4  ;;  %594 = vmatpush1.bf16.msra.mxu1 %v629_v4 }
  0x16   : > { %361 = vmatprep.subr.bf16.mxu0 %v630_v5  ;;  %591 = vmatprep.subr.bf16.mxu1 %v630_v5 }
  0x17   : > { %289 = vperm.xlu1 %623, %v271_v10   ;;  %279 = vperm.xlu0 %622, %v269_v11  }
  0x19   : > { %362 = vmatpush1.bf16.msra.mxu0 %v632_v6  ;;  %595 = vmatpush1.bf16.msra.mxu1 %v632_v6 }
  0x1a   : > { %363 = vmatprep.subr.bf16.mxu0 %v633_v9  ;;  %592 = vmatprep.subr.bf16.mxu1 %v633_v9 }
  0x1d   : > { %364 = vmatpush1.bf16.msra.mxu0 %v635_v12  ;;  %596 = vmatpush1.bf16.msra.mxu1 %v635_v12 }
  0x20   : > { %573 = vmatmul.mubr.msk.bf16.vlgmr.msra.gmra.mxu0 %vm342_vm0, %v636_v13  ;;  %574 = vmatmul.mubr.msk.bf16.vlgmr.msra.gmra.mxu1 %vm342_vm0, %v637_v14 }
  0x8e   : > { %v285_v15 = vpop.permute.xlu1 %284  ;;  %v275_v16 = vpop.permute.xlu0 %274 }
  0x92   : > { %v290_v27 = vpop.permute.xlu1 %289  ;;  %v280_v28 = vpop.permute.xlu0 %279 }
  0xe0   : > { %v383_v17 = vpop.f32.mrf.mxu0  ;;  %v393_v18 = vpop.f32.mrf.mxu1 }
  0xe1   : > { %v384_v21 = vadd.f32 %v383_v17, %v275_v16  ;;  %v394_v22 = vadd.f32 %v393_v18, %v285_v15 }
  0xe2   : > { %v385_v19 = vpop.f32.mrf.mxu0  ;;  %v395_v20 = vpop.f32.mrf.mxu1 }
  0xe3   : > { %v386_v23 = vadd.f32 %v385_v19, %v275_v16  ;;  %v396_v24 = vadd.f32 %v395_v20, %v285_v15 }
  0xe4   : > { %v387_v25 = vpop.f32.mrf.mxu0  ;;  %v397_v26 = vpop.f32.mrf.mxu1 }
  0xe5   : > { %v585_v29 = vpack.c.bf16 %v386_v23, %v384_v21  ;;  %v587_v30 = vpack.c.bf16 %v396_v24, %v394_v22  ;;  %v388_v33 = vadd.f32 %v387_v25, %v280_v28  ;;  %v398_v34 = vadd.f32 %v397_v26, %v290_v27 }
  0xe6   : > { %v389_v31 = vpop.f32.mrf.mxu0  ;;  %v399_v32 = vpop.f32.mrf.mxu1 }
  0xe7   : > { %426 = vst [vmem:[%s253_s30] sm:$0xff] %v585_v29  ;;  %428 = vst [vmem:[%s253_s30 + $0x10] sm:$0xff] %v587_v30  ;;  %v390_v35 = vadd.f32 %v389_v31, %v280_v28  ;;  %v400_v36 = vadd.f32 %v399_v32, %v290_v27 }
  0xe9   : > { %v586_v37 = vpack.c.bf16 %v390_v35, %v388_v33  ;;  %v588_v38 = vpack.c.bf16 %v400_v36, %v398_v34 }
  0xeb   : > { %427 = vst [vmem:[%s253_s30 + $0x8] sm:$0xff] %v586_v37  ;;  %429 = vst [vmem:[%s253_s30 + $0x18] sm:$0xff] %v588_v38 }
  0xec PF: > { %s13_s14 = sadd.s32 1, %s660_s14   ;;  %s735_s12 = smov %s656_s13 }
  0xed   : > { %p10_p5 = scmp.ge.s32.totalorder %s13_s14, 4   ;;  %s736_s13 = smov %s738_s15 }
  0xef   :  { %12 = sbr.rel (!%p10_p5) target bundleno = 2 (0x2), region = 68 }

</bundles_post_ra>
